<compile_context>
chip_gen: v6e
topology: v6e:2x2x1
jax: 0.10.0
libtpu: 0.0.40
codegen_flags: <defaults>
</compile_context>

<pallas_src>
import functools

import jax
import jax.numpy as jnp
from jax.experimental import pallas as pl
from jax.experimental.pallas import tpu as pltpu

EPS = 1e-5


def _pono_kernel(x_ref, gamma_ref, beta_ref, y_ref, mean_ref, std_ref, *,
                 eps, inv_c, inv_cm1):
    """PONO for one (batch-tile, lane-strip) block.

    x_ref:     (Nb, C, L)  channels on sublanes, flattened spatial on lanes
    gamma_ref: (1, L)      float32
    beta_ref:  (1, L)      float32
    y_ref:     (Nb, C, L)
    mean_ref:  (Nb, 1, L)
    std_ref:   (Nb, 1, L)
    """
    xf = x_ref[...].astype(jnp.float32)                            # (Nb, C, L)
    mean = jnp.sum(xf, axis=1, keepdims=True) * inv_c              # (Nb, 1, L)
    diff = xf - mean                                               # xf dead past here
    var = jnp.sum(diff * diff, axis=1, keepdims=True) * inv_cm1    # unbiased (/(C-1))
    veps = var + eps
    inv_std = jax.lax.rsqrt(veps)          # EUP slot; VALU stays free for the mul/adds
    std = veps * inv_std                   # == sqrt(var + eps), no extra transcendental
    scale = inv_std * gamma_ref[...].astype(jnp.float32)           # (Nb, 1, L)
    y = diff * scale + beta_ref[...].astype(jnp.float32)
    y_ref[...] = y.astype(y_ref.dtype)
    mean_ref[...] = mean.astype(mean_ref.dtype)
    std_ref[...] = std.astype(std_ref.dtype)


def pono_forward(x, gamma, beta, *, eps=EPS, hw_block=None, batch_block=None,
                 vmem_budget_bytes=12 * 1024 * 1024):
    """Pallas PONO.forward(x) -> (y, mean, std); x is NCHW, gamma/beta are (1,1,H,W)."""
    N, C, H, W = x.shape
    assert C > 1, "unbiased channel variance needs at least 2 channels"
    HW = H * W
    itemsize = jnp.dtype(x.dtype).itemsize

    # Lane-dense repack (pure reshapes): spatial -> lane axis, channels -> sublanes.
    x_f = x.reshape(N, C, HW)
    # Affine params stay float32 in HBM (tiny); cast happens inside the kernel.
    g_f = gamma.reshape(1, HW).astype(jnp.float32)
    b_f = beta.reshape(1, HW).astype(jnp.float32)

    # ---- lane-strip size: largest 128-multiple (<= 2048) whose double-buffered
    # x/y blocks fit the VMEM budget (safe on v5e's 16 MiB scoped default and
    # v7x's 64 MiB physical VMEM). ----
    if hw_block is None:
        per_lane_bytes = 4 * C * itemsize                 # x + y blocks, double-buffered
        max_lanes = max(128, vmem_budget_bytes // per_lane_bytes)
        hw_block = min(2048, (max_lanes // 128) * 128)
    hw_block = max(128, (hw_block // 128) * 128)
    if hw_block >= HW:
        hw_block = HW                 # single full-extent strip (always a legal block)
        n_hw = 1
    else:
        n_hw = pl.cdiv(HW, hw_block)  # partial last strip is masked on store

    # ---- batch tile: pack several samples per step for small feature maps so each
    # DMA/compute step amortizes per-step overhead; keep blocks exact divisors of N. ----
    if batch_block is None:
        target = max(1, 2048 // hw_block)
        per_sample_bytes = 4 * C * hw_block * itemsize
        vmem_cap = max(1, vmem_budget_bytes // per_sample_bytes)
        batch_block = min(N, target, vmem_cap)
    nb = max(1, min(int(batch_block), N))
    while N % nb:
        nb -= 1
    n_b = N // nb

    kernel = functools.partial(_pono_kernel, eps=eps,
                               inv_c=1.0 / C, inv_cm1=1.0 / (C - 1))

    y, mean, std = pl.pallas_call(
        kernel,
        # hw-strips outer, batch inner: gamma/beta block index is constant across the
        # inner batch loop so Pallas skips their re-DMA; on v7x megacore the larger
        # (n_hw) axis is split across the two TensorCores.
        grid=(n_hw, n_b),
        in_specs=[
            pl.BlockSpec((nb, C, hw_block), lambda j, n: (n, 0, j)),
            pl.BlockSpec((1, hw_block), lambda j, n: (0, j)),
            pl.BlockSpec((1, hw_block), lambda j, n: (0, j)),
        ],
        out_specs=[
            pl.BlockSpec((nb, C, hw_block), lambda j, n: (n, 0, j)),
            pl.BlockSpec((nb, 1, hw_block), lambda j, n: (n, 0, j)),
            pl.BlockSpec((nb, 1, hw_block), lambda j, n: (n, 0, j)),
        ],
        out_shape=[
            jax.ShapeDtypeStruct((N, C, HW), x.dtype),
            jax.ShapeDtypeStruct((N, 1, HW), x.dtype),
            jax.ShapeDtypeStruct((N, 1, HW), x.dtype),
        ],
        compiler_params=pltpu.CompilerParams(
            dimension_semantics=("parallel", "parallel")),
    )(x_f, g_f, b_f)

    return (y.reshape(N, C, H, W),
            mean.reshape(N, 1, H, W),
            std.reshape(N, 1, H, W))


# ----------------------------- pure-JAX reference ----------------------------
def reference_forward(x, gamma, beta, eps=EPS):
    mean = jnp.mean(x, axis=1, keepdims=True)
    var = jnp.var(x, axis=1, keepdims=True, ddof=1)      # PyTorch var() is unbiased
    std = jnp.sqrt(var + eps)
    y = (x - mean) / std * gamma + beta
    return y, mean, std


if __name__ == "__main__":
    # PONO(input_size=(H, W), affine=True) applied to an NCHW feature map.
    N, C, H, W = 2, 4, 16, 16

    key = jax.random.PRNGKey(0)
    kx, kg, kb = jax.random.split(key, 3)
    x = jax.random.normal(kx, (N, C, H, W), jnp.float32)
    # Module initializes gamma=1, beta=0; perturb to exercise the affine path.
    gamma = 1.0 + 0.1 * jax.random.normal(kg, (1, 1, H, W), jnp.float32)
    beta = 0.1 * jax.random.normal(kb, (1, 1, H, W), jnp.float32)

    y, mean, std = pono_forward(x, gamma, beta)
    y, mean, std = jax.block_until_ready((y, mean, std))

    y_ref, mean_ref, std_ref = reference_forward(x, gamma, beta)
    assert y.shape == (N, C, H, W)
    assert mean.shape == (N, 1, H, W) and std.shape == (N, 1, H, W)
    assert jnp.allclose(y, y_ref, rtol=1e-5, atol=1e-5), float(jnp.abs(y - y_ref).max())
    assert jnp.allclose(mean, mean_ref, rtol=1e-5, atol=1e-5), float(jnp.abs(mean - mean_ref).max())
    assert jnp.allclose(std, std_ref, rtol=1e-5, atol=1e-5), float(jnp.abs(std - std_ref).max())

    print("KERNEL_OK")
</pallas_src>

<mosaic_0001>
module attributes {stable_mosaic.version = 11 : i64} {
  func.func @_pono_kernel(%arg0: i32, %arg1: i32, %arg2: memref<2x4x256xf32, #tpu.memory_space<vmem>>, %arg3: memref<1x256xf32, #tpu.memory_space<vmem>>, %arg4: memref<1x256xf32, #tpu.memory_space<vmem>>, %arg5: memref<2x4x256xf32, #tpu.memory_space<vmem>>, %arg6: memref<2x1x256xf32, #tpu.memory_space<vmem>>, %arg7: memref<2x1x256xf32, #tpu.memory_space<vmem>>) attributes {dimension_semantics = [#tpu.dimension_semantics<parallel>, #tpu.dimension_semantics<parallel>], iteration_bounds = array<i64: 1, 1>, scalar_prefetch = 0 : i64, scratch_operands = 0 : i64, tpu.core_type = #tpu.core_type<tc>, window_params = [{transform_indices = @transform_0, window_bounds = array<i64: 2, 4, 256>}, {transform_indices = @transform_1, window_bounds = array<i64: 1, 256>}, {transform_indices = @transform_2, window_bounds = array<i64: 1, 256>}, {transform_indices = @transform_3, window_bounds = array<i64: 2, 4, 256>}, {transform_indices = @transform_4, window_bounds = array<i64: 2, 1, 256>}, {transform_indices = @transform_5, window_bounds = array<i64: 2, 1, 256>}]} {
    %c0 = arith.constant 0 : index
    %c0_0 = arith.constant 0 : index
    %c0_1 = arith.constant 0 : index
    %0 = vector.load %arg2[%c0, %c0_0, %c0_1] : memref<2x4x256xf32, #tpu.memory_space<vmem>>, vector<2x4x256xf32>
    %cst = arith.constant dense<0.000000e+00> : vector<2x256xf32>
    %1 = vector.multi_reduction <add>, %0, %cst [1] : vector<2x4x256xf32> to vector<2x256xf32>
    %2 = vector.shape_cast %1 : vector<2x256xf32> to vector<2x1x256xf32>
    %cst_2 = arith.constant 2.500000e-01 : f32
    %3 = vector.broadcast %cst_2 : f32 to vector<2x1x256xf32>
    %4 = arith.mulf %2, %3 : vector<2x1x256xf32>
    %5 = vector.broadcast %4 : vector<2x1x256xf32> to vector<2x4x256xf32>
    %6 = arith.subf %0, %5 : vector<2x4x256xf32>
    %7 = arith.mulf %6, %6 : vector<2x4x256xf32>
    %cst_3 = arith.constant dense<0.000000e+00> : vector<2x256xf32>
    %8 = vector.multi_reduction <add>, %7, %cst_3 [1] : vector<2x4x256xf32> to vector<2x256xf32>
    %9 = vector.shape_cast %8 : vector<2x256xf32> to vector<2x1x256xf32>
    %cst_4 = arith.constant 0.333333343 : f32
    %10 = vector.broadcast %cst_4 : f32 to vector<2x1x256xf32>
    %11 = arith.mulf %9, %10 : vector<2x1x256xf32>
    %cst_5 = arith.constant 9.99999974E-6 : f32
    %12 = vector.broadcast %cst_5 : f32 to vector<2x1x256xf32>
    %13 = arith.addf %11, %12 : vector<2x1x256xf32>
    %14 = math.rsqrt %13 : vector<2x1x256xf32>
    %15 = arith.mulf %13, %14 : vector<2x1x256xf32>
    %c0_6 = arith.constant 0 : index
    %c0_7 = arith.constant 0 : index
    %16 = vector.load %arg3[%c0_6, %c0_7] : memref<1x256xf32, #tpu.memory_space<vmem>>, vector<1x256xf32>
    %17 = vector.shape_cast %16 : vector<1x256xf32> to vector<1x1x256xf32>
    %18 = vector.broadcast %17 : vector<1x1x256xf32> to vector<2x1x256xf32>
    %19 = arith.mulf %14, %18 : vector<2x1x256xf32>
    %20 = vector.broadcast %19 : vector<2x1x256xf32> to vector<2x4x256xf32>
    %21 = arith.mulf %6, %20 : vector<2x4x256xf32>
    %c0_8 = arith.constant 0 : index
    %c0_9 = arith.constant 0 : index
    %22 = vector.load %arg4[%c0_8, %c0_9] : memref<1x256xf32, #tpu.memory_space<vmem>>, vector<1x256xf32>
    %23 = vector.shape_cast %22 : vector<1x256xf32> to vector<1x1x256xf32>
    %24 = vector.broadcast %23 : vector<1x1x256xf32> to vector<2x4x256xf32>
    %25 = arith.addf %21, %24 : vector<2x4x256xf32>
    %c0_10 = arith.constant 0 : index
    %c0_11 = arith.constant 0 : index
    %c0_12 = arith.constant 0 : index
    %26 = vector.load %arg5[%c0_10, %c0_11, %c0_12] : memref<2x4x256xf32, #tpu.memory_space<vmem>>, vector<2x4x256xf32>
    tpu.vector_store %arg5[%c0_10, %c0_11, %c0_12], %25 {strides = array<i32>} : memref<2x4x256xf32, #tpu.memory_space<vmem>>, vector<2x4x256xf32>,
    %c0_13 = arith.constant 0 : index
    %c0_14 = arith.constant 0 : index
    %c0_15 = arith.constant 0 : index
    %27 = vector.load %arg6[%c0_13, %c0_14, %c0_15] : memref<2x1x256xf32, #tpu.memory_space<vmem>>, vector<2x1x256xf32>
    tpu.vector_store %arg6[%c0_13, %c0_14, %c0_15], %4 {strides = array<i32>} : memref<2x1x256xf32, #tpu.memory_space<vmem>>, vector<2x1x256xf32>,
    %c0_16 = arith.constant 0 : index
    %c0_17 = arith.constant 0 : index
    %c0_18 = arith.constant 0 : index
    %28 = vector.load %arg7[%c0_16, %c0_17, %c0_18] : memref<2x1x256xf32, #tpu.memory_space<vmem>>, vector<2x1x256xf32>
    tpu.vector_store %arg7[%c0_16, %c0_17, %c0_18], %15 {strides = array<i32>} : memref<2x1x256xf32, #tpu.memory_space<vmem>>, vector<2x1x256xf32>,
    return
  }
  func.func @transform_0(%arg0: i32, %arg1: i32) -> (i32, i32, i32) {
    %c0_i32 = arith.constant 0 : i32
    %c0_i32_0 = arith.constant 0 : i32
    return %arg1, %c0_i32, %arg0 : i32, i32, i32
  }
  func.func @transform_1(%arg0: i32, %arg1: i32) -> (i32, i32) {
    %c0_i32 = arith.constant 0 : i32
    %c0_i32_0 = arith.constant 0 : i32
    return %c0_i32, %arg0 : i32, i32
  }
  func.func @transform_2(%arg0: i32, %arg1: i32) -> (i32, i32) {
    %c0_i32 = arith.constant 0 : i32
    %c0_i32_0 = arith.constant 0 : i32
    return %c0_i32, %arg0 : i32, i32
  }
  func.func @transform_3(%arg0: i32, %arg1: i32) -> (i32, i32, i32) {
    %c0_i32 = arith.constant 0 : i32
    %c0_i32_0 = arith.constant 0 : i32
    return %arg1, %c0_i32, %arg0 : i32, i32, i32
  }
  func.func @transform_4(%arg0: i32, %arg1: i32) -> (i32, i32, i32) {
    %c0_i32 = arith.constant 0 : i32
    %c0_i32_0 = arith.constant 0 : i32
    return %arg1, %c0_i32, %arg0 : i32, i32, i32
  }
  func.func @transform_5(%arg0: i32, %arg1: i32) -> (i32, i32, i32) {
    %c0_i32 = arith.constant 0 : i32
    %c0_i32_0 = arith.constant 0 : i32
    return %arg1, %c0_i32, %arg0 : i32, i32, i32
  }
}

</mosaic_0001>

<bundles_post_ra>
// kernel: tpu_custom_call.1
= control target key start
LH: loop header
LB: loop body
LE: loop exit
PB: predicated region body
PF: predicated region fallthrough
CT: control target
= control target key end

     0   :  { %11 = vsyncpa [#allocation3], 0  ;;  %s572_s0 = inlined_call_operand.hbm [shape: f32[2,4,256], index: 0, kind: input, shape index: {}]   ;;  %s573_s1 = inlined_call_operand.hbm [shape: f32[1,256], index: 1, kind: input, shape index: {}]   ;;  %s574_s2 = inlined_call_operand.vmem [shape: f32[1,256], index: 2, kind: input, shape index: {}]   ;;  %s575_s3 = inlined_call_operand.hbm [shape: f32[2,4,256], index: 3, kind: output, shape index: {0}]   ;;  %s576_s4 = inlined_call_operand.hbm [shape: f32[2,1,256], index: 4, kind: output, shape index: {1}]   ;;  %s577_s5 = inlined_call_operand.hbm [shape: f32[2,1,256], index: 5, kind: output, shape index: {2}]  }
   0x1   :  { %12 = vsyncpa [#allocation6], 0 }
   0x2   :  { %13 = vsyncpa [#allocation4], 0 }
   0x3   :  { %14 = vsyncpa [#allocation9], 0  ;;  %s457_s18 = smov [#allocation2]  }
   0x4   :  { %s20_s19 = sshll.u32 %s457_s18, 4  ;;  %s21_s19 = int_to_ptr.vmem [resolvable:$true] %s20_s19 }
   0x5   :  { %s357_s20 = scalar_lea.vmem %s21_s19, 256  ;;  %p362_p1 = scmp.lt.s32.totalorder %s21_s19, %s21_s19 }
   0x6   :  { %p358_p0 = scmp.ne.s32.totalorder %s21_s19, %s357_s20  ;;  %p363_p2 = scmp.lt.s32.totalorder %s357_s20, %s357_s20 }
   0x8   :  { %p364_p3 = por %p363_p2, %p362_p1 }
   0xa   :  { %p365_p4 = pnand %p364_p3, %p358_p0 }
   0xc   :  { %368 = shalt.err (!%p365_p4)
}
   0xd   :  { %s458_s21 = smov 128   ;;  %s459_s22 = smov 8  }
   0xe   :  { %26 = dma.hbm_to_vmem [thread:$0]  %s572_s0, 256, %s21_s19, [#allocation3], %s458_s21, %s458_s21, %s459_s22  }
   0xf   :  { %s460_s25 = smov [#allocation5]  }
  0x10   :  { %s33_s26 = sshll.u32 %s460_s25, 4  ;;  %s34_s26 = int_to_ptr.vmem [resolvable:$true] %s33_s26 }
  0x11   :  { %s377_s27 = scalar_lea.vmem %s34_s26, 32  ;;  %p382_p6 = scmp.lt.s32.totalorder %s34_s26, %s34_s26 }
  0x12   :  { %p378_p5 = scmp.ne.s32.totalorder %s34_s26, %s377_s27  ;;  %p383_p7 = scmp.lt.s32.totalorder %s377_s27, %s377_s27 }
  0x14   :  { %p384_p8 = por %p383_p7, %p382_p6 }
  0x16   :  { %p385_p9 = pnand %p384_p8, %p378_p5 }
  0x18   :  { %388 = shalt.err (!%p385_p9)
}
  0x19   :  { %36 = dma.hbm_to_vmem [thread:$0]  %s573_s1, 32, %s34_s26, [#allocation6]  }
  0x1a   :  { %449 = dma.done.wait [#allocation3], 256  }
  0x1b   :  { %450 = vsyncadd [#allocation3], 4294967040 }
  0x1c   :  { %451 = dma.done.wait [#allocation6], 32  }
  0x1d   :  { %452 = vsyncadd [#allocation6], 4294967264  ;;  %vm53_vm0 = vcmask 1043456   ;;  %v45_v0 = vld [vmem:[#allocation2] sm:$0xff]  ;;  %v46_v1 = vld [vmem:[#allocation2 + $0x8] sm:$0xff]  ;;  %v150_v24 = vlaneseq  ;;  %s462_s0 = smov [#allocation8]  }
  0x1e   :  { %v49_v2 = vcombine.high %v45_v0, %v45_v0  ;;  %v54_v3 = vsel %vm53_vm0, %v45_v0, 0.0  ;;  %v50_v4 = vcombine.high %v46_v1, %v46_v1  ;;  %v68_v5 = vsel %vm53_vm0, %v46_v1, 0.0  ;;  %s297_s1 = sshll.u32 %s462_s0, 4  ;;  %s298_s1 = int_to_ptr.vmem [resolvable:$true] %s297_s1 }
  0x1f   :  { %v55_v6 = vrot.slane %v54_v3, 4  ;;  %v69_v7 = vrot.slane %v68_v5, 4  ;;  %v461_v18 = vmov 1966171168   ;;  %v510_v34 = vshrl.u32 %v150_v24, 7  ;;  %s389_s30 = scalar_lea.vmem %s298_s1, 64  ;;  %p394_p11 = scmp.lt.s32.totalorder %s298_s1, %s298_s1 }
  0x20   :  { %v61_v8 = vsel %vm53_vm0, %v49_v2, 0.0  ;;  %v75_v9 = vsel %vm53_vm0, %v50_v4, 0.0  ;;  %v207_v19 = vunpack.c.l.s4 %v461_v18  ;;  %vm521_vm1 = vcmp.lt.s32.totalorder %v150_v24, 256  ;;  %p390_p10 = scmp.ne.s32.totalorder %s298_s1, %s389_s30  ;;  %p395_p12 = scmp.lt.s32.totalorder %s389_s30, %s389_s30 }
  0x21   :  { %v56_v10 = vadd.f32 %v55_v6, %v54_v3  ;;  %v62_v11 = vrot.slane %v61_v8, 4  ;;  %v70_v12 = vadd.f32 %v69_v7, %v68_v5  ;;  %v76_v13 = vrot.slane %v75_v9, 4 }
  0x22   :  { %v208_v29 = vunpack.c.0.s8 %v207_v19  ;;  %p396_p13 = por %p395_p12, %p394_p11 }
  0x23   :  { %v57_v14 = vrot.slane %v56_v10, 2  ;;  %v63_v15 = vadd.f32 %v62_v11, %v61_v8  ;;  %v71_v16 = vrot.slane %v70_v12, 2  ;;  %v77_v17 = vadd.f32 %v76_v13, %v75_v9 }
  0x24   :  { %v513_v40 = vsub.s32 %v208_v29, %v510_v34  ;;  %p397_p0 = pnand %p396_p13, %p390_p10 }
  0x25   :  { %v58_v20 = vadd.f32 %v57_v14, %v56_v10  ;;  %v64_v21 = vrot.slane %v63_v15, 2  ;;  %v72_v22 = vadd.f32 %v71_v16, %v70_v12  ;;  %v78_v23 = vrot.slane %v77_v17, 2 }
  0x27   :  { %v59_v25 = vrot.slane %v58_v20, 1  ;;  %v65_v26 = vadd.f32 %v64_v21, %v63_v15  ;;  %v73_v27 = vrot.slane %v72_v22, 1  ;;  %v79_v28 = vadd.f32 %v78_v23, %v77_v17 }
  0x29   :  { %v60_v30 = vadd.f32 %v59_v25, %v58_v20  ;;  %v66_v31 = vrot.slane %v65_v26, 1  ;;  %v74_v32 = vadd.f32 %v73_v27, %v72_v22  ;;  %v80_v33 = vrot.slane %v79_v28, 1 }
  0x2b   :  { %v67_v35 = vadd.f32 %v66_v31, %v65_v26  ;;  %v82_v36 = vmul.f32 0.25, %v60_v30  ;;  %v81_v37 = vadd.f32 %v80_v33, %v79_v28  ;;  %v84_v38 = vmul.f32 0.25, %v74_v32 }
  0x2d   :  { %v83_v39 = vmul.f32 0.25, %v67_v35  ;;  %v85_v41 = vmul.f32 0.25, %v81_v37 }
  0x2f   :  { %v90_v42 = vcombine.low %v82_v36, %v83_v39  ;;  %v91_v43 = vcombine.low %v84_v38, %v85_v41 }
  0x31   :  { %v212_v44 = vrot.slane %v90_v42, %v513_v40  ;;  %v226_v45 = vrot.slane %v91_v43, %v513_v40  ;;  %v517_v46 = vsub.f32 %v45_v0, %v90_v42  ;;  %v519_v47 = vsub.f32 %v46_v1, %v91_v43 }
  0x33   :  { %v219_v49 = vrot.slane %v212_v44, %v513_v40  ;;  %v233_v50 = vrot.slane %v226_v45, %v513_v40  ;;  %v96_v51 = vmul.f32 %v517_v46, %v517_v46  ;;  %v97_v52 = vmul.f32 %v519_v47, %v519_v47 }
  0x35   :  { %240 = vst.msk [vmem:[#allocation8] sm:$0x3] %vm521_vm1, %v219_v49  ;;  %241 = vst.msk [vmem:[#allocation8 + $0x2] sm:$0x3] %vm521_vm1, %v233_v50  ;;  %v100_v53 = vcombine.high %v96_v51, %v96_v51  ;;  %v104_v54 = vsel %vm53_vm0, %v96_v51, 0.0  ;;  %v101_v55 = vcombine.high %v97_v52, %v97_v52  ;;  %v118_v56 = vsel %vm53_vm0, %v97_v52, 0.0 }
  0x36   :  { %v105_v57 = vrot.slane %v104_v54, 4  ;;  %v119_v58 = vrot.slane %v118_v56, 4 }
  0x37   :  { %400 = shalt.err (!%p397_p0)
}
  0x38   :  { %s463_s6 = smov 32   ;;  %s464_s7 = smov 2   ;;  %v111_v59 = vsel %vm53_vm0, %v100_v53, 0.0  ;;  %v125_v60 = vsel %vm53_vm0, %v101_v55, 0.0  ;;  %v106_v61 = vadd.f32 %v105_v57, %v104_v54  ;;  %v120_v63 = vadd.f32 %v119_v58, %v118_v56  ;;  %v148_v28 = vld [vmem:[#allocation5] sm:$0x3] }
  0x39   :  { %303 = dma.vmem_to_hbm [thread:$0]  %s298_s1, 64, %s576_s4, [#allocation9], %s463_s6, %s463_s6, %s464_s7   ;;  %v112_v62 = vrot.slane %v111_v59, 4  ;;  %v126_v0 = vrot.slane %v125_v60, 4  ;;  %v152_v27 = vsub.s32 0, %v510_v34  ;;  %v156_v29 = vsub.s32 1, %v510_v34 }
  0x3a   :  { %v107_v1 = vrot.slane %v106_v61, 2  ;;  %v121_v3 = vrot.slane %v120_v63, 2  ;;  %v190_v32 = vld [vmem:[%s574_s2] sm:$0x3]  ;;  %s465_s2 = smov [#allocation10]   ;;  %s466_s12 = smov [#allocation7]  }
  0x3b   :  { %v113_v2 = vadd.f32 %v112_v62, %v111_v59  ;;  %v127_v4 = vadd.f32 %v126_v0, %v125_v60  ;;  %v153_v30 = vrot.slane %v148_v28, %v152_v27  ;;  %v157_v31 = vrot.slane %v148_v28, %v156_v29  ;;  %s309_s11 = sshll.u32 %s465_s2, 4  ;;  %s285_s13 = sshll.u32 %s466_s12, 4  ;;  %s310_s11 = int_to_ptr.vmem [resolvable:$true] %s309_s11  ;;  %s286_s13 = int_to_ptr.vmem [resolvable:$true] %s285_s13 }
  0x3c   :  { %v108_v5 = vadd.f32 %v107_v1, %v106_v61  ;;  %v122_v7 = vadd.f32 %v121_v3, %v120_v63  ;;  %v195_v39 = vrot.slane %v190_v32, %v152_v27  ;;  %v199_v49 = vrot.slane %v190_v32, %v156_v29  ;;  %s409_s14 = scalar_lea.vmem %s310_s11, 64  ;;  %p414_p2 = scmp.lt.s32.totalorder %s310_s11, %s310_s11 }
  0x3d   :  { %v114_v6 = vrot.slane %v113_v2, 2  ;;  %v128_v8 = vrot.slane %v127_v4, 2  ;;  %p410_p1 = scmp.ne.s32.totalorder %s310_s11, %s409_s14  ;;  %p415_p3 = scmp.lt.s32.totalorder %s409_s14, %s409_s14 }
  0x3e   :  { %v109_v9 = vrot.slane %v108_v5, 1  ;;  %v123_v11 = vrot.slane %v122_v7, 1  ;;  %v200_v58 = vcombine.low %v195_v39, %v199_v49 }
  0x3f   :  { %v115_v10 = vadd.f32 %v114_v6, %v113_v2  ;;  %v129_v12 = vadd.f32 %v128_v8, %v127_v4  ;;  %p416_p4 = por %p415_p3, %p414_p2 }
  0x40   :  { %v110_v13 = vadd.f32 %v109_v9, %v108_v5  ;;  %v124_v15 = vadd.f32 %v123_v11, %v122_v7 }
  0x41   :  { %v116_v14 = vrot.slane %v115_v10, 1  ;;  %v130_v16 = vrot.slane %v129_v12, 1  ;;  %p417_p5 = pnand %p416_p4, %p410_p1 }
  0x42   :  { %v132_v18 = vmul.f32 0.33333334, %v110_v13  ;;  %v134_v20 = vmul.f32 0.33333334, %v124_v15 }
  0x43   :  { %v117_v17 = vadd.f32 %v116_v14, %v115_v10  ;;  %v131_v19 = vadd.f32 %v130_v16, %v129_v12 }
  0x44   :  { %v136_v22 = vadd.f32 1e-05, %v132_v18  ;;  %v138_v24 = vadd.f32 1e-05, %v134_v20 }
  0x45   :  { %v133_v21 = vmul.f32 0.33333334, %v117_v17  ;;  %v135_v23 = vmul.f32 0.33333334, %v131_v19 }
  0x46   :  { %341 = vrsqrt.f32 %v136_v22 }
  0x47   :  { %v137_v25 = vadd.f32 1e-05, %v133_v21  ;;  %v139_v26 = vadd.f32 1e-05, %v135_v23  ;;  %343 = vrsqrt.f32 %v138_v24 }
  0x49   :  { %345 = vrsqrt.f32 %v137_v25 }
  0x4a   :  { %347 = vrsqrt.f32 %v139_v26 }
  0x53   :  { %v342_v33 = vpop.eup %341 }
  0x54   :  { %v344_v35 = vpop.eup %343  ;;  %v160_v36 = vmul.f32 %v342_v33, %v153_v30  ;;  %v144_v37 = vmul.f32 %v342_v33, %v136_v22 }
  0x55   :  { %v162_v41 = vmul.f32 %v344_v35, %v153_v30  ;;  %v146_v42 = vmul.f32 %v344_v35, %v138_v24 }
  0x56   :  { %v346_v38 = vpop.eup %345  ;;  %v167_v45 = vrot.slane %v160_v36, %v152_v27 }
  0x57   :  { %v348_v43 = vpop.eup %347  ;;  %v161_v44 = vmul.f32 %v346_v38, %v157_v31  ;;  %v145_v50 = vmul.f32 %v346_v38, %v137_v25  ;;  %v175_v51 = vrot.slane %v162_v41, %v152_v27 }
  0x58   :  { %v163_v34 = vmul.f32 %v348_v43, %v157_v31  ;;  %v147_v52 = vmul.f32 %v348_v43, %v139_v26 }
  0x59   :  { %v171_v53 = vrot.slane %v161_v44, %v152_v27  ;;  %v246_v54 = vcombine.low %v144_v37, %v145_v50 }
  0x5a   :  { %v179_v55 = vrot.slane %v163_v34, %v152_v27  ;;  %v261_v56 = vcombine.low %v146_v42, %v147_v52 }
  0x5b   :  { %v184_v57 = vcombine.low %v167_v45, %v171_v53  ;;  %v253_v59 = vrot.slane %v246_v54, %v513_v40 }
  0x5c   :  { %v185_v60 = vcombine.low %v175_v51, %v179_v55  ;;  %v268_v61 = vrot.slane %v261_v56, %v513_v40 }
  0x5d   :  { %v188_v62 = vmul.f32 %v184_v57, %v517_v46  ;;  %v260_v63 = vrot.slane %v253_v59, %v513_v40 }
  0x5e   :  { %v189_v0 = vmul.f32 %v185_v60, %v519_v47  ;;  %v275_v1 = vrot.slane %v268_v61, %v513_v40 }
  0x5f   :  { %v202_v2 = vadd.f32 %v200_v58, %v188_v62  ;;  %278 = vst.msk [vmem:[#allocation10] sm:$0x3] %vm521_vm1, %v260_v63 }
  0x60   :  { %v203_v3 = vadd.f32 %v200_v58, %v189_v0  ;;  %279 = vst.msk [vmem:[#allocation10 + $0x2] sm:$0x3] %vm521_vm1, %v275_v1 }
  0x61   :  { %204 = vst [vmem:[#allocation7] sm:$0xff] %v202_v2 }
  0x62   :  { %420 = shalt.err (!%p417_p5)
}
  0x63   :  { %315 = dma.vmem_to_hbm [thread:$0]  %s310_s11, 64, %s577_s5, [#allocation9], %s463_s6, %s463_s6, %s464_s7   ;;  %205 = vst [vmem:[#allocation7 + $0x8] sm:$0xff] %v203_v3 }
  0x64   :  { %s429_s17 = scalar_lea.vmem %s286_s13, 256  ;;  %p434_p7 = scmp.lt.s32.totalorder %s286_s13, %s286_s13 }
  0x65   :  { %p430_p6 = scmp.ne.s32.totalorder %s286_s13, %s429_s17  ;;  %p435_p8 = scmp.lt.s32.totalorder %s429_s17, %s429_s17 }
  0x67   :  { %p436_p9 = por %p435_p8, %p434_p7 }
  0x69   :  { %p437_p10 = pnand %p436_p9, %p430_p6 }
  0x6b   :  { %440 = shalt.err (!%p437_p10)
}
  0x6c   :  { %291 = dma.vmem_to_hbm [thread:$0]  %s286_s13, 256, %s575_s3, [#allocation4], %s458_s21, %s458_s21, %s459_s22  }
  0x6d   :  { %453 = dma.done.wait [#allocation4], 256  }
  0x6e   :  { %454 = vsyncadd [#allocation4], 4294967040 }
  0x6f   :  { %455 = dma.done.wait [#allocation9], 128  }
  0x70   :  { %456 = vsyncadd [#allocation9], 4294967168 }
  0x71   :  { %325 = vsyncpa [#allocation3], 1 }
  0x72   :  { %326 = vsyncpa [#allocation6], 1 }
  0x73   :  { %327 = vsyncpa [#allocation4], 1 }
  0x74   :  { %328 = vsyncpa [#allocation9], 1 }

</bundles_post_ra>
